<compile_context>
chip_gen: v6e
topology: v6e:2x2x1
jax: 0.10.0
libtpu: 0.0.40
codegen_flags: <defaults>
</compile_context>

<pallas_src>
import functools

import jax
import jax.numpy as jnp
import numpy as np
from jax.experimental import pallas as pl
from jax.experimental.pallas import tpu as pltpu


# (q, sh, sw) channel blocks of the parity-folded input:  q = output-column parity the
# block feeds, (sh, sw) = input shift.  Only 6 of 8 combinations carry nonzero weights.
_BLOCKS = ((0, 0, 0), (0, 1, 0), (1, 0, 0), (1, 0, 1), (1, 1, 0), (1, 1, 1))

# _TAPS[(ph, q, sh, sw)] = (kh, kw):  out[2a+ph, 2b+q] += x[a+sh, b+sw] * w[:, :, kh, kw]
_TAPS = {
    (0, 0, 0, 0): (1, 1),
    (0, 1, 0, 0): (1, 2), (0, 1, 0, 1): (1, 0),
    (1, 0, 0, 0): (2, 1), (1, 0, 1, 0): (0, 1),
    (1, 1, 0, 0): (2, 2), (1, 1, 0, 1): (2, 0), (1, 1, 1, 0): (0, 2), (1, 1, 1, 1): (0, 0),
}


# --------------------------------------------------------------------------- kernels

def _stats_kernel(x_ref, w_ref, b_ref, stat_ref):
    # x_ref: (1, 6*Cin, th*2W) bf16 ; w_ref: (2*Cout, 6*Cin) bf16 ; b_ref: (2*Cout, 1) f32
    # stat_ref: (1, 1, 2*Cout, 2) -> [:, 0] = sum(y), [:, 1] = sum(y^2)  over this block.
    y = jnp.dot(w_ref[...], x_ref[0], preferred_element_type=jnp.float32)  # (2*Cout, L2)
    y = jnp.maximum(y + b_ref[...], 0.0)                                   # bias + ReLU
    s1 = jnp.sum(y, axis=1, keepdims=True)                                 # (2*Cout, 1)
    s2 = jnp.sum(y * y, axis=1, keepdims=True)
    stat_ref[0, 0] = jnp.concatenate([s1, s2], axis=1)                     # (2*Cout, 2)


def _fused_deconv_bn_kernel(x_ref, w_ref, b_ref, scale_ref, shift_ref, o_ref, *,
                            cout, th, w2):
    # x_ref : (1, 6*Cin, th*w2) bf16, lanes already W-interleaved (w2 = 2*W)
    # w_ref : (2*Cout, 6*Cin) bf16, rows = (ph, co), ph-major
    # b_/scale_/shift_ref : (2*Cout, 1) f32
    # o_ref : (1, Cout, 2*th*w2) f32 == flattened (Cout, 2*th, 2*W) NCHW slab
    y = jnp.dot(w_ref[...], x_ref[0], preferred_element_type=jnp.float32)  # (2*Cout, th*w2)
    y = jnp.maximum(y + b_ref[...], 0.0)                                   # bias + ReLU
    y = y * scale_ref[...] + shift_ref[...]                                # BatchNorm affine
    y_even = y[:cout, :]      # ph = 0 -> output rows 2a
    y_odd = y[cout:, :]       # ph = 1 -> output rows 2a + 1
    # H-parity interleave: alternate 2*W-lane chunks (static lane slices + lane concat;
    # VPU/XLU only, replaces v2's O(L^2) spread matmuls).
    chunks = []
    for a in range(th):
        lo, hi = a * w2, (a + 1) * w2
        chunks.append(y_even[:, lo:hi])
        chunks.append(y_odd[:, lo:hi])
    o_ref[0] = jnp.concatenate(chunks, axis=-1)


# --------------------------------------------------------------------------- wrapper helpers

def _build_polyphase_weights(weight):
    """weight (Cin, Cout, 3, 3) PyTorch ConvTranspose2d layout -> (2*Cout, 6*Cin) f32."""
    cin, cout = weight.shape[0], weight.shape[1]
    w = weight.astype(jnp.float32)
    zero = jnp.zeros((cout, cin), jnp.float32)
    rows = []
    for ph in (0, 1):
        cols = []
        for (q, sh, sw) in _BLOCKS:
            tap = _TAPS.get((ph, q, sh, sw))
            cols.append(zero if tap is None else w[:, :, tap[0], tap[1]].T)
        rows.append(jnp.concatenate(cols, axis=1))
    return jnp.concatenate(rows, axis=0)                    # (2*Cout, 6*Cin)


def _build_dilated_input(x):
    """x (N, Cin, H, W) f32 -> (N, 6*Cin, H*2W): shifted, parity-masked, W-dilated copies.

    Built in the wrapper (x is tiny); lanes of every channel block are already in final
    output-column order, so the in-kernel matmul needs no lane scatter afterwards.
    """
    n, cin, h, w = x.shape
    xp = jnp.pad(x, ((0, 0), (0, 0), (0, 1), (0, 1)))       # zero halo for the +1 shifts
    zeros = jnp.zeros((n, cin, h, w), x.dtype)
    parts = []
    for (q, sh, sw) in _BLOCKS:
        z = xp[:, :, sh:sh + h, sw:sw + w]
        pair = (z, zeros) if q == 0 else (zeros, z)
        parts.append(jnp.stack(pair, axis=-1).reshape(n, cin, h, 2 * w))
    return jnp.concatenate(parts, axis=1).reshape(n, 6 * cin, h * 2 * w)


def _vmem_limit_bytes():
    cap = 128 * 1024 * 1024
    try:
        cap = int(pltpu.get_tpu_info().vmem_capacity_bytes)   # 64 MiB on v7x
    except Exception:
        pass
    return min(cap * 3 // 4, 96 * 1024 * 1024)


def _pick_tile_h(h, w, cin6, cout, in_bytes, budget):
    """Largest legal H-tile whose (double-buffered) blocks fit the VMEM budget."""
    def fits(th):
        l2 = 2 * th * w
        est = 2 * cin6 * l2 * in_bytes + 2 * cout * 2 * l2 * 4 + 64 * 1024
        return est <= budget
    if fits(h):                       # whole image per step (amortizes grid overhead)
        return h
    best = None
    for th in range(h - 1, 0, -1):
        if h % th == 0 and (2 * th * w) % 128 == 0:     # keep blocks (8,128)-legal
            if best is None:
                best = th
            if fits(th):
                return th
    return best if best is not None else h


# --------------------------------------------------------------------------- forward

def upsample_forward(x_nchw, weight, bias, gamma, beta, eps=1e-5,
                     compute_dtype=jnp.bfloat16):
    """weight: (Cin, Cout, 3, 3) PyTorch ConvTranspose2d layout.  Returns NCHW f32."""
    n, cin, h, w = x_nchw.shape
    cout = weight.shape[1]
    hout, wout = 2 * h, 2 * w
    cin6 = 6 * cin

    in_bytes = np.dtype(compute_dtype).itemsize
    vmem_limit = _vmem_limit_bytes()
    th = _pick_tile_h(h, w, cin6, cout, in_bytes, budget=vmem_limit // 2)
    nhb = h // th
    l2 = 2 * th * w                                   # input-block lane width

    x2 = _build_dilated_input(x_nchw.astype(jnp.float32)).astype(compute_dtype)
    w2 = _build_polyphase_weights(weight).astype(compute_dtype)
    b2 = jnp.tile(bias.astype(jnp.float32), 2).reshape(2 * cout, 1)

    x_spec = pl.BlockSpec((1, cin6, l2), lambda i, j: (i, 0, j))
    w_spec = pl.BlockSpec((2 * cout, cin6), lambda i, j: (0, 0))
    v_spec = pl.BlockSpec((2 * cout, 1), lambda i, j: (0, 0))
    cparams = pltpu.CompilerParams(dimension_semantics=("parallel", "parallel"),
                                   vmem_limit_bytes=vmem_limit)

    matmul_flops = 2 * (2 * cout) * cin6 * (n * h * 2 * w)
    x2_bytes = int(x2.size) * in_bytes
    const_bytes = (int(w2.size) * in_bytes + 3 * 2 * cout * 4) * n * nhb

    # ---- pass 1: batch statistics of y = relu(conv_transpose(x) + bias)  (tiny outputs)
    stats = pl.pallas_call(
        _stats_kernel,
        out_shape=jax.ShapeDtypeStruct((n, nhb, 2 * cout, 2), jnp.float32),
        grid_spec=pltpu.PrefetchScalarGridSpec(
            num_scalar_prefetch=0,
            grid=(n, nhb),
            in_specs=[x_spec, w_spec, v_spec],
            out_specs=pl.BlockSpec((1, 1, 2 * cout, 2), lambda i, j: (i, j, 0, 0))),
        compiler_params=cparams,
        cost_estimate=pl.CostEstimate(
            flops=matmul_flops, transcendentals=0,
            bytes_accessed=x2_bytes + const_bytes + n * nhb * 2 * cout * 2 * 4),
    )(x2, w2, b2)

    count = n * hout * wout
    stat = jnp.sum(stats, axis=(0, 1))                        # (2*Cout, 2)
    total = stat[:, 0].reshape(2, cout).sum(axis=0)           # fold the 2 row-parity groups
    totsq = stat[:, 1].reshape(2, cout).sum(axis=0)
    mean = total / count
    var = jnp.maximum(totsq / count - mean * mean, 0.0)       # biased variance (train mode)
    scale = gamma.astype(jnp.float32) * jax.lax.rsqrt(var + eps)
    shift = beta.astype(jnp.float32) - mean * scale
    scale2 = jnp.tile(scale, 2).reshape(2 * cout, 1)
    shift2 = jnp.tile(shift, 2).reshape(2 * cout, 1)

    # ---- pass 2: recompute the cheap conv, fuse bias + ReLU + BN, single NCHW write ----
    kernel2 = functools.partial(_fused_deconv_bn_kernel, cout=cout, th=th, w2=2 * w)
    out_flat = pl.pallas_call(
        kernel2,
        out_shape=jax.ShapeDtypeStruct((n, cout, hout * wout), jnp.float32),
        grid_spec=pltpu.PrefetchScalarGridSpec(
            num_scalar_prefetch=0,
            grid=(n, nhb),
            in_specs=[x_spec, w_spec, v_spec, v_spec, v_spec],
            out_specs=pl.BlockSpec((1, cout, 2 * l2), lambda i, j: (i, 0, j))),
        compiler_params=cparams,
        cost_estimate=pl.CostEstimate(
            flops=matmul_flops, transcendentals=0,
            bytes_accessed=x2_bytes + const_bytes + n * cout * hout * wout * 4),
    )(x2, w2, b2, scale2, shift2)

    return out_flat.reshape(n, cout, hout, wout)              # metadata-only reshape


# --------------------------------------------------------------------------- reference

def _reference(x_nchw, weight, bias, gamma, beta, eps=1e-5):
    """Pure-JAX reference (lhs-dilated conv == transposed conv), f32."""
    cout = weight.shape[1]
    w_conv = jnp.transpose(jnp.flip(weight, axis=(2, 3)), (2, 3, 0, 1))   # HWIO
    y = jax.lax.conv_general_dilated(
        x_nchw.astype(jnp.float32), w_conv.astype(jnp.float32),
        window_strides=(1, 1), padding=((1, 2), (1, 2)), lhs_dilation=(2, 2),
        dimension_numbers=("NCHW", "HWIO", "NCHW"))
    y = y + bias.reshape(1, cout, 1, 1)
    y = jnp.maximum(y, 0.0)
    mean = jnp.mean(y, axis=(0, 2, 3), keepdims=True)
    var = jnp.var(y, axis=(0, 2, 3), keepdims=True)
    return ((y - mean) * jax.lax.rsqrt(var + eps) * gamma.reshape(1, cout, 1, 1)
            + beta.reshape(1, cout, 1, 1))


if __name__ == "__main__":
    N, Cin, Cout, H, W = 2, 4, 8, 16, 16

    key = jax.random.PRNGKey(0)
    kx, kw, kb = jax.random.split(key, 3)
    x = jax.random.normal(kx, (N, Cin, H, W), jnp.float32)
    weight = 0.1 * jax.random.normal(kw, (Cin, Cout, 3, 3), jnp.float32)  # PyTorch layout
    bias = 0.1 * jax.random.normal(kb, (Cout,), jnp.float32)
    gamma = jnp.ones((Cout,), jnp.float32)   # BatchNorm2d default init
    beta = jnp.zeros((Cout,), jnp.float32)

    # The kernel feeds the MXU bf16 operands (per perf review).  Pre-round the test inputs
    # to bf16 so the f32 reference sees identical operand values and the comparison
    # isolates kernel logic from quantization noise.
    x = x.astype(jnp.bfloat16).astype(jnp.float32)
    weight = weight.astype(jnp.bfloat16).astype(jnp.float32)

    fwd = jax.jit(upsample_forward)
    out = jax.block_until_ready(fwd(x, weight, bias, gamma, beta))
    ref = jax.block_until_ready(_reference(x, weight, bias, gamma, beta))

    assert out.shape == (N, Cout, 2 * H, 2 * W), out.shape
    np.testing.assert_allclose(np.asarray(out), np.asarray(ref), rtol=1e-3, atol=1e-3)
    print("KERNEL_OK")
</pallas_src>

<mosaic_0001>
module attributes {stable_mosaic.version = 11 : i64} {
  func.func @_stats_kernel(%arg0: i32, %arg1: i32, %arg2: memref<1x24x512xbf16, #tpu.memory_space<vmem>>, %arg3: memref<16x24xbf16, #tpu.memory_space<vmem>>, %arg4: memref<16x1xf32, #tpu.memory_space<vmem>>, %arg5: memref<1x1x16x2xf32, #tpu.memory_space<vmem>>) attributes {dimension_semantics = [#tpu.dimension_semantics<parallel>, #tpu.dimension_semantics<parallel>], iteration_bounds = array<i64: 2, 1>, scalar_prefetch = 0 : i64, scratch_operands = 0 : i64, tpu.core_type = #tpu.core_type<tc>, window_params = [{transform_indices = @transform_0, window_bounds = array<i64: 1, 24, 512>}, {pipeline_mode = #tpu.pipeline_mode<synchronous>, transform_indices = @transform_1, window_bounds = array<i64: 16, 24>}, {pipeline_mode = #tpu.pipeline_mode<synchronous>, transform_indices = @transform_2, window_bounds = array<i64: 16, 1>}, {transform_indices = @transform_3, window_bounds = array<i64: 1, 1, 16, 2>}]} {
    %c0 = arith.constant 0 : index
    %c0_0 = arith.constant 0 : index
    %0 = vector.load %arg3[%c0, %c0_0] : memref<16x24xbf16, #tpu.memory_space<vmem>>, vector<16x24xbf16>
    %c0_1 = arith.constant 0 : index
    %c0_2 = arith.constant 0 : index
    %c0_3 = arith.constant 0 : index
    %1 = vector.load %arg2[%c0_1, %c0_2, %c0_3] : memref<1x24x512xbf16, #tpu.memory_space<vmem>>, vector<1x24x512xbf16>
    %2 = vector.shape_cast %1 : vector<1x24x512xbf16> to vector<24x512xbf16>
    %cst = arith.constant dense<0.000000e+00> : vector<16x512xf32>
    %3 = tpu.matmul %0, %2, %cst {dimension_numbers = #tpu.dot_dimension_numbers<[1], [0], [0], [1], [0, 0, 1, 1], [], []>} : vector<16x24xbf16>, vector<24x512xbf16>, vector<16x512xf32> -> vector<16x512xf32>
    %c0_4 = arith.constant 0 : index
    %c0_5 = arith.constant 0 : index
    %4 = vector.load %arg4[%c0_4, %c0_5] : memref<16x1xf32, #tpu.memory_space<vmem>>, vector<16x1xf32>
    %5 = vector.broadcast %4 : vector<16x1xf32> to vector<16x512xf32>
    %6 = arith.addf %3, %5 : vector<16x512xf32>
    %cst_6 = arith.constant 0.000000e+00 : f32
    %7 = vector.broadcast %cst_6 : f32 to vector<16x512xf32>
    %8 = arith.maximumf %6, %7 : vector<16x512xf32>
    %cst_7 = arith.constant dense<0.000000e+00> : vector<16xf32>
    %9 = vector.multi_reduction <add>, %8, %cst_7 [1] : vector<16x512xf32> to vector<16xf32>
    %10 = vector.shape_cast %9 : vector<16xf32> to vector<16x1xf32>
    %11 = arith.mulf %8, %8 : vector<16x512xf32>
    %cst_8 = arith.constant dense<0.000000e+00> : vector<16xf32>
    %12 = vector.multi_reduction <add>, %11, %cst_8 [1] : vector<16x512xf32> to vector<16xf32>
    %13 = vector.shape_cast %12 : vector<16xf32> to vector<16x1xf32>
    %14 = tpu.concatenate %10, %13 in 1 : vector<16x1xf32>, vector<16x1xf32> -> vector<16x2xf32>
    %c0_9 = arith.constant 0 : index
    %c0_10 = arith.constant 0 : index
    %c0_11 = arith.constant 0 : index
    %c0_12 = arith.constant 0 : index
    %15 = vector.load %arg5[%c0_9, %c0_10, %c0_11, %c0_12] : memref<1x1x16x2xf32, #tpu.memory_space<vmem>>, vector<1x1x16x2xf32>
    %16 = vector.shape_cast %15 : vector<1x1x16x2xf32> to vector<16x2xf32>
    %17 = vector.shape_cast %14 : vector<16x2xf32> to vector<1x1x16x2xf32>
    tpu.vector_store %arg5[%c0_9, %c0_10, %c0_11, %c0_12], %17 {strides = array<i32>} : memref<1x1x16x2xf32, #tpu.memory_space<vmem>>, vector<1x1x16x2xf32>,
    return
  }
  func.func @transform_0(%arg0: i32, %arg1: i32) -> (i32, i32, i32) {
    %c0_i32 = arith.constant 0 : i32
    %c0_i32_0 = arith.constant 0 : i32
    return %arg0, %c0_i32, %arg1 : i32, i32, i32
  }
  func.func @transform_1(%arg0: i32, %arg1: i32) -> (i32, i32) {
    %c0_i32 = arith.constant 0 : i32
    %c0_i32_0 = arith.constant 0 : i32
    %c0_i32_1 = arith.constant 0 : i32
    return %c0_i32, %c0_i32_0 : i32, i32
  }
  func.func @transform_2(%arg0: i32, %arg1: i32) -> (i32, i32) {
    %c0_i32 = arith.constant 0 : i32
    %c0_i32_0 = arith.constant 0 : i32
    %c0_i32_1 = arith.constant 0 : i32
    return %c0_i32, %c0_i32_0 : i32, i32
  }
  func.func @transform_3(%arg0: i32, %arg1: i32) -> (i32, i32, i32, i32) {
    %c0_i32 = arith.constant 0 : i32
    %c0_i32_0 = arith.constant 0 : i32
    %c0_i32_1 = arith.constant 0 : i32
    return %arg0, %arg1, %c0_i32, %c0_i32_0 : i32, i32, i32, i32
  }
}

module attributes {stable_mosaic.version = 11 : i64} {
  func.func @_fused_deconv_bn_kernel(%arg0: i32, %arg1: i32, %arg2: memref<1x24x512xbf16, #tpu.memory_space<vmem>>, %arg3: memref<16x24xbf16, #tpu.memory_space<vmem>>, %arg4: memref<16x1xf32, #tpu.memory_space<vmem>>, %arg5: memref<16x1xf32, #tpu.memory_space<vmem>>, %arg6: memref<16x1xf32, #tpu.memory_space<vmem>>, %arg7: memref<1x8x1024xf32, #tpu.memory_space<vmem>>) attributes {dimension_semantics = [#tpu.dimension_semantics<parallel>, #tpu.dimension_semantics<parallel>], iteration_bounds = array<i64: 2, 1>, scalar_prefetch = 0 : i64, scratch_operands = 0 : i64, tpu.core_type = #tpu.core_type<tc>, window_params = [{transform_indices = @transform_0, window_bounds = array<i64: 1, 24, 512>}, {pipeline_mode = #tpu.pipeline_mode<synchronous>, transform_indices = @transform_1, window_bounds = array<i64: 16, 24>}, {pipeline_mode = #tpu.pipeline_mode<synchronous>, transform_indices = @transform_2, window_bounds = array<i64: 16, 1>}, {pipeline_mode = #tpu.pipeline_mode<synchronous>, transform_indices = @transform_3, window_bounds = array<i64: 16, 1>}, {pipeline_mode = #tpu.pipeline_mode<synchronous>, transform_indices = @transform_4, window_bounds = array<i64: 16, 1>}, {transform_indices = @transform_5, window_bounds = array<i64: 1, 8, 1024>}]} {
    %c0 = arith.constant 0 : index
    %c0_0 = arith.constant 0 : index
    %0 = vector.load %arg3[%c0, %c0_0] : memref<16x24xbf16, #tpu.memory_space<vmem>>, vector<16x24xbf16>
    %c0_1 = arith.constant 0 : index
    %c0_2 = arith.constant 0 : index
    %c0_3 = arith.constant 0 : index
    %1 = vector.load %arg2[%c0_1, %c0_2, %c0_3] : memref<1x24x512xbf16, #tpu.memory_space<vmem>>, vector<1x24x512xbf16>
    %2 = vector.shape_cast %1 : vector<1x24x512xbf16> to vector<24x512xbf16>
    %cst = arith.constant dense<0.000000e+00> : vector<16x512xf32>
    %3 = tpu.matmul %0, %2, %cst {dimension_numbers = #tpu.dot_dimension_numbers<[1], [0], [0], [1], [0, 0, 1, 1], [], []>} : vector<16x24xbf16>, vector<24x512xbf16>, vector<16x512xf32> -> vector<16x512xf32>
    %c0_4 = arith.constant 0 : index
    %c0_5 = arith.constant 0 : index
    %4 = vector.load %arg4[%c0_4, %c0_5] : memref<16x1xf32, #tpu.memory_space<vmem>>, vector<16x1xf32>
    %5 = vector.broadcast %4 : vector<16x1xf32> to vector<16x512xf32>
    %6 = arith.addf %3, %5 : vector<16x512xf32>
    %cst_6 = arith.constant 0.000000e+00 : f32
    %7 = vector.broadcast %cst_6 : f32 to vector<16x512xf32>
    %8 = arith.maximumf %6, %7 : vector<16x512xf32>
    %c0_7 = arith.constant 0 : index
    %c0_8 = arith.constant 0 : index
    %9 = vector.load %arg5[%c0_7, %c0_8] : memref<16x1xf32, #tpu.memory_space<vmem>>, vector<16x1xf32>
    %10 = vector.broadcast %9 : vector<16x1xf32> to vector<16x512xf32>
    %11 = arith.mulf %8, %10 : vector<16x512xf32>
    %c0_9 = arith.constant 0 : index
    %c0_10 = arith.constant 0 : index
    %12 = vector.load %arg6[%c0_9, %c0_10] : memref<16x1xf32, #tpu.memory_space<vmem>>, vector<16x1xf32>
    %13 = vector.broadcast %12 : vector<16x1xf32> to vector<16x512xf32>
    %14 = arith.addf %11, %13 : vector<16x512xf32>
    %15 = vector.extract_strided_slice %14 {offsets = [0, 0], sizes = [8, 512], strides = [1, 1]} : vector<16x512xf32> to vector<8x512xf32>
    %16 = vector.extract_strided_slice %14 {offsets = [8, 0], sizes = [8, 512], strides = [1, 1]} : vector<16x512xf32> to vector<8x512xf32>
    %17 = vector.extract_strided_slice %15 {offsets = [0, 0], sizes = [8, 32], strides = [1, 1]} : vector<8x512xf32> to vector<8x32xf32>
    %18 = vector.extract_strided_slice %16 {offsets = [0, 0], sizes = [8, 32], strides = [1, 1]} : vector<8x512xf32> to vector<8x32xf32>
    %19 = vector.extract_strided_slice %15 {offsets = [0, 32], sizes = [8, 32], strides = [1, 1]} : vector<8x512xf32> to vector<8x32xf32>
    %20 = vector.extract_strided_slice %16 {offsets = [0, 32], sizes = [8, 32], strides = [1, 1]} : vector<8x512xf32> to vector<8x32xf32>
    %21 = vector.extract_strided_slice %15 {offsets = [0, 64], sizes = [8, 32], strides = [1, 1]} : vector<8x512xf32> to vector<8x32xf32>
    %22 = vector.extract_strided_slice %16 {offsets = [0, 64], sizes = [8, 32], strides = [1, 1]} : vector<8x512xf32> to vector<8x32xf32>
    %23 = vector.extract_strided_slice %15 {offsets = [0, 96], sizes = [8, 32], strides = [1, 1]} : vector<8x512xf32> to vector<8x32xf32>
    %24 = vector.extract_strided_slice %16 {offsets = [0, 96], sizes = [8, 32], strides = [1, 1]} : vector<8x512xf32> to vector<8x32xf32>
    %25 = vector.extract_strided_slice %15 {offsets = [0, 128], sizes = [8, 32], strides = [1, 1]} : vector<8x512xf32> to vector<8x32xf32>
    %26 = vector.extract_strided_slice %16 {offsets = [0, 128], sizes = [8, 32], strides = [1, 1]} : vector<8x512xf32> to vector<8x32xf32>
    %27 = vector.extract_strided_slice %15 {offsets = [0, 160], sizes = [8, 32], strides = [1, 1]} : vector<8x512xf32> to vector<8x32xf32>
    %28 = vector.extract_strided_slice %16 {offsets = [0, 160], sizes = [8, 32], strides = [1, 1]} : vector<8x512xf32> to vector<8x32xf32>
    %29 = vector.extract_strided_slice %15 {offsets = [0, 192], sizes = [8, 32], strides = [1, 1]} : vector<8x512xf32> to vector<8x32xf32>
    %30 = vector.extract_strided_slice %16 {offsets = [0, 192], sizes = [8, 32], strides = [1, 1]} : vector<8x512xf32> to vector<8x32xf32>
    %31 = vector.extract_strided_slice %15 {offsets = [0, 224], sizes = [8, 32], strides = [1, 1]} : vector<8x512xf32> to vector<8x32xf32>
    %32 = vector.extract_strided_slice %16 {offsets = [0, 224], sizes = [8, 32], strides = [1, 1]} : vector<8x512xf32> to vector<8x32xf32>
    %33 = vector.extract_strided_slice %15 {offsets = [0, 256], sizes = [8, 32], strides = [1, 1]} : vector<8x512xf32> to vector<8x32xf32>
    %34 = vector.extract_strided_slice %16 {offsets = [0, 256], sizes = [8, 32], strides = [1, 1]} : vector<8x512xf32> to vector<8x32xf32>
    %35 = vector.extract_strided_slice %15 {offsets = [0, 288], sizes = [8, 32], strides = [1, 1]} : vector<8x512xf32> to vector<8x32xf32>
    %36 = vector.extract_strided_slice %16 {offsets = [0, 288], sizes = [8, 32], strides = [1, 1]} : vector<8x512xf32> to vector<8x32xf32>
    %37 = vector.extract_strided_slice %15 {offsets = [0, 320], sizes = [8, 32], strides = [1, 1]} : vector<8x512xf32> to vector<8x32xf32>
    %38 = vector.extract_strided_slice %16 {offsets = [0, 320], sizes = [8, 32], strides = [1, 1]} : vector<8x512xf32> to vector<8x32xf32>
    %39 = vector.extract_strided_slice %15 {offsets = [0, 352], sizes = [8, 32], strides = [1, 1]} : vector<8x512xf32> to vector<8x32xf32>
    %40 = vector.extract_strided_slice %16 {offsets = [0, 352], sizes = [8, 32], strides = [1, 1]} : vector<8x512xf32> to vector<8x32xf32>
    %41 = vector.extract_strided_slice %15 {offsets = [0, 384], sizes = [8, 32], strides = [1, 1]} : vector<8x512xf32> to vector<8x32xf32>
    %42 = vector.extract_strided_slice %16 {offsets = [0, 384], sizes = [8, 32], strides = [1, 1]} : vector<8x512xf32> to vector<8x32xf32>
    %43 = vector.extract_strided_slice %15 {offsets = [0, 416], sizes = [8, 32], strides = [1, 1]} : vector<8x512xf32> to vector<8x32xf32>
    %44 = vector.extract_strided_slice %16 {offsets = [0, 416], sizes = [8, 32], strides = [1, 1]} : vector<8x512xf32> to vector<8x32xf32>
    %45 = vector.extract_strided_slice %15 {offsets = [0, 448], sizes = [8, 32], strides = [1, 1]} : vector<8x512xf32> to vector<8x32xf32>
    %46 = vector.extract_strided_slice %16 {offsets = [0, 448], sizes = [8, 32], strides = [1, 1]} : vector<8x512xf32> to vector<8x32xf32>
    %47 = vector.extract_strided_slice %15 {offsets = [0, 480], sizes = [8, 32], strides = [1, 1]} : vector<8x512xf32> to vector<8x32xf32>
    %48 = vector.extract_strided_slice %16 {offsets = [0, 480], sizes = [8, 32], strides = [1, 1]} : vector<8x512xf32> to vector<8x32xf32>
    %49 = tpu.concatenate %17, %18, %19, %20, %21, %22, %23, %24, %25, %26, %27, %28, %29, %30, %31, %32 in 1 : vector<8x32xf32>, vector<8x32xf32>, vector<8x32xf32>, vector<8x32xf32>, vector<8x32xf32>, vector<8x32xf32>, vector<8x32xf32>, vector<8x32xf32>, vector<8x32xf32>, vector<8x32xf32>, vector<8x32xf32>, vector<8x32xf32>, vector<8x32xf32>, vector<8x32xf32>, vector<8x32xf32>, vector<8x32xf32> -> vector<8x512xf32>
    %50 = tpu.concatenate %33, %34, %35, %36, %37, %38, %39, %40, %41, %42, %43, %44, %45, %46, %47, %48 in 1 : vector<8x32xf32>, vector<8x32xf32>, vector<8x32xf32>, vector<8x32xf32>, vector<8x32xf32>, vector<8x32xf32>, vector<8x32xf32>, vector<8x32xf32>, vector<8x32xf32>, vector<8x32xf32>, vector<8x32xf32>, vector<8x32xf32>, vector<8x32xf32>, vector<8x32xf32>, vector<8x32xf32>, vector<8x32xf32> -> vector<8x512xf32>
    %51 = tpu.concatenate %49, %50 in 1 : vector<8x512xf32>, vector<8x512xf32> -> vector<8x1024xf32>
    %c0_11 = arith.constant 0 : index
    %c0_12 = arith.constant 0 : index
    %c0_13 = arith.constant 0 : index
    %52 = vector.load %arg7[%c0_11, %c0_12, %c0_13] : memref<1x8x1024xf32, #tpu.memory_space<vmem>>, vector<1x8x1024xf32>
    %53 = vector.shape_cast %52 : vector<1x8x1024xf32> to vector<8x1024xf32>
    %54 = vector.shape_cast %51 : vector<8x1024xf32> to vector<1x8x1024xf32>
    tpu.vector_store %arg7[%c0_11, %c0_12, %c0_13], %54 {strides = array<i32>} : memref<1x8x1024xf32, #tpu.memory_space<vmem>>, vector<1x8x1024xf32>,
    return
  }
  func.func @transform_0(%arg0: i32, %arg1: i32) -> (i32, i32, i32) {
    %c0_i32 = arith.constant 0 : i32
    %c0_i32_0 = arith.constant 0 : i32
    return %arg0, %c0_i32, %arg1 : i32, i32, i32
  }
  func.func @transform_1(%arg0: i32, %arg1: i32) -> (i32, i32) {
    %c0_i32 = arith.constant 0 : i32
    %c0_i32_0 = arith.constant 0 : i32
    %c0_i32_1 = arith.constant 0 : i32
    return %c0_i32, %c0_i32_0 : i32, i32
  }
  func.func @transform_2(%arg0: i32, %arg1: i32) -> (i32, i32) {
    %c0_i32 = arith.constant 0 : i32
    %c0_i32_0 = arith.constant 0 : i32
    %c0_i32_1 = arith.constant 0 : i32
    return %c0_i32, %c0_i32_0 : i32, i32
  }
  func.func @transform_3(%arg0: i32, %arg1: i32) -> (i32, i32) {
    %c0_i32 = arith.constant 0 : i32
    %c0_i32_0 = arith.constant 0 : i32
    %c0_i32_1 = arith.constant 0 : i32
    return %c0_i32, %c0_i32_0 : i32, i32
  }
  func.func @transform_4(%arg0: i32, %arg1: i32) -> (i32, i32) {
    %c0_i32 = arith.constant 0 : i32
    %c0_i32_0 = arith.constant 0 : i32
    %c0_i32_1 = arith.constant 0 : i32
    return %c0_i32, %c0_i32_0 : i32, i32
  }
  func.func @transform_5(%arg0: i32, %arg1: i32) -> (i32, i32, i32) {
    %c0_i32 = arith.constant 0 : i32
    %c0_i32_0 = arith.constant 0 : i32
    return %arg0, %c0_i32, %arg1 : i32, i32, i32
  }
}

</mosaic_0001>

<bundles_post_ra>
// kernel: tile.18
= control target key start
LH: loop header
LB: loop body
LE: loop exit
PB: predicated region body
PF: predicated region fallthrough
CT: control target
= control target key end

     0   :  { %s22_s0 = inlined_call_operand.vmem [shape: f32[8], index: 0, kind: input, shape index: {}]   ;;  %s23_s1 = inlined_call_operand.vmem [shape: f32[2,8], index: 1, kind: output, shape index: {}]  }
   0x1   :  { %v4_v0 = vld [vmem:[%s22_s0] ss:$0 sm:$0xff] }
   0x2   :  { %5 = vst [vmem:[%s23_s1] sm:$0x3] %v4_v0 }

// kernel: tile.0
= control target key start
LH: loop header
LB: loop body
LE: loop exit
PB: predicated region body
PF: predicated region fallthrough
CT: control target
= control target key end

     0   :  { %s67_s8 = smov 125   ;;  %vm8_vm0 = vcmask 7168   ;;  %s68_s11 = smov 126   ;;  %s118_s0 = inlined_call_operand.vmem [shape: f32[2,8], index: 0, kind: input, shape index: {}]   ;;  %s119_s1 = inlined_call_operand.vmem [shape: f32[16,1], index: 1, kind: output, shape index: {}]  }
   0x1   :  { %v5_v0 = vld [vmem:[%s118_s0] sm:$0x3]  ;;  %s66_s0 = smov 127   ;;  %s69_s12 = smov 124  }
   0x2   :  { %6 = vst [vmem:[#allocation0] sm:$0x3] %v5_v0  ;;  %s70_s13 = smov 123   ;;  %s71_s14 = smov 122  }
   0x3   :  { %s72_s15 = smov 121  }
   0x9   :  { %v10_v1 = vld [vmem:[#allocation0] sm:$0x3]  }
   0xa   :  { %v22_v2 = vld [vmem:[#allocation0] sm:$0x3]   ;;  %11 = vrot.lane.b32.xlu0 %v10_v1, %s66_s0 }
   0xb   :  { %23 = vrot.lane.b32.xlu1 %v22_v2, %s67_s8  ;;  %v16_v3 = vld [vmem:[#allocation0] sm:$0x3]  }
   0xc   :  { %v28_v4 = vld [vmem:[#allocation0] sm:$0x3]  }
   0xd   :  { %v7_v5 = vld [vmem:[#allocation0] sm:$0x3]  }
   0xe   :  { %9 = vst.msk [vmem:[%s119_s1] ss:$8 sm:$0x3] %vm8_vm0, %v7_v5   ;;  %17 = vrot.lane.b32.xlu0 %v16_v3, %s68_s11  ;;  %v34_v6 = vld [vmem:[#allocation0] sm:$0x3]  }
   0xf   :  { %29 = vrot.lane.b32.xlu1 %v28_v4, %s69_s12  ;;  %v40_v7 = vld [vmem:[#allocation0] sm:$0x3]  }
  0x10   :  { %v46_v8 = vld [vmem:[#allocation0] sm:$0x3]  }
  0x12   :  { %35 = vrot.lane.b32.xlu0 %v34_v6, %s70_s13 }
  0x13   :  { %41 = vrot.lane.b32.xlu1 %v40_v7, %s71_s14 }
  0x16   :  { %47 = vrot.lane.b32.xlu0 %v46_v8, %s72_s15 }
  0x7c   :  { %v12_v9 = vpop.permute.xlu0 %11  }
  0x7d   :  { %v24_v10 = vpop.permute.xlu1 %23   ;;  %52 = vst.msk [vmem:[%s119_s1 + $0x1] ss:$8 sm:$0x3] %vm8_vm0, %v12_v9  }
  0x7e   :  { %54 = vst.msk [vmem:[%s119_s1 + $0x3] ss:$8 sm:$0x3] %vm8_vm0, %v24_v10  }
  0x80   :  { %v18_v11 = vpop.permute.xlu0 %17  }
  0x81   :  { %v30_v12 = vpop.permute.xlu1 %29   ;;  %53 = vst.msk [vmem:[%s119_s1 + $0x2] ss:$8 sm:$0x3] %vm8_vm0, %v18_v11  }
  0x82   :  { %55 = vst.msk [vmem:[%s119_s1 + $0x4] ss:$8 sm:$0x3] %vm8_vm0, %v30_v12  }
  0x84   :  { %v36_v13 = vpop.permute.xlu0 %35  }
  0x85   :  { %v42_v14 = vpop.permute.xlu1 %41   ;;  %56 = vst.msk [vmem:[%s119_s1 + $0x5] ss:$8 sm:$0x3] %vm8_vm0, %v36_v13  }
  0x86   :  { %57 = vst.msk [vmem:[%s119_s1 + $0x6] ss:$8 sm:$0x3] %vm8_vm0, %v42_v14  }
  0x88   :  { %v48_v15 = vpop.permute.xlu0 %47  }
  0x89   :  { %58 = vst.msk [vmem:[%s119_s1 + $0x7] ss:$8 sm:$0x3] %vm8_vm0, %v48_v15  }

// kernel: squeeze.20
= control target key start
LH: loop header
LB: loop body
LE: loop exit
PB: predicated region body
PF: predicated region fallthrough
CT: control target
= control target key end

     0   :  { %vm8_vm0 = vcmask 64512   ;;  %s42_s0 = inlined_call_operand.vmem [shape: f32[16], index: 0, kind: input, shape index: {}]   ;;  %s43_s1 = inlined_call_operand.vmem [shape: f32[2,8], index: 1, kind: output, shape index: {}]  }
   0x1   :  { %v5_v0 = vld [vmem:[%s42_s0] sm:$0x1]  ;;  %s25_s0 = smov 120  }
   0x2   :  { %6 = vst [vmem:[#allocation1] sm:$0x1] %v5_v0 }
   0x9   :  { %v10_v1 = vld [vmem:[#allocation1] sm:$0x1]  }
   0xa   :  { %v7_v2 = vld [vmem:[#allocation1] sm:$0x1]   ;;  %11 = vrot.lane.b32.xlu0 %v10_v1, %s25_s0 }
   0xb   :  { %9 = vst.msk [vmem:[#allocation0] sm:$0x1] %vm8_vm0, %v7_v2  }
  0x7c   :  { %v12_v3 = vpop.permute.xlu0 %11  }
  0x7d   :  { %15 = vst.msk [vmem:[#allocation0 + $0x1] sm:$0x1] %vm8_vm0, %v12_v3  }
  0x84   :  { %v20_v4 = vld [vmem:[#allocation0] sm:$0x3] }
  0x85   :  { %23 = vst [vmem:[%s43_s1] sm:$0x3] %v20_v4 }

// kernel: upsample_forward.2
= control target key start
LH: loop header
LB: loop body
LE: loop exit
PB: predicated region body
PF: predicated region fallthrough
CT: control target
= control target key end

     0   :  { %s606_s12 = smov 0   ;;  %s608_s13 = smov 0   ;;  %s652_s0 = inlined_call_operand.vmem [shape: bf16[2,24,512], index: 0, kind: input, shape index: {}]   ;;  %s653_s1 = inlined_call_operand.vmem [shape: bf16[16,24], index: 1, kind: input, shape index: {}]   ;;  %s654_s2 = inlined_call_operand.vmem [shape: f32[16,1], index: 2, kind: input, shape index: {}]   ;;  %s655_s3 = inlined_call_operand.vmem [shape: f32[2,1,16,2], index: 3, kind: output, shape index: {}]  }
   0x1   :  { %s610_s14 = smov 0  }
   0x2 LB: > { %s25_s15 = sadd.s32 1, %s579_s13  ;;  %p503_p0 = scmp.ge.s32.totalorder %s583_s14, 1  ;;  %s583_s14 = sphi %s610_s14, %s13_s14   ;;  %s579_s13 = sphi %s608_s13, %s657_s13   ;;  %s575_s12 = sphi %s606_s12, %s656_s12  }
   0x3   : > { %p27_p1 = scmp.ge.s32.totalorder %s25_s15, 2  ;;  %p158_p2 = scmp.lt.s32.totalorder %s583_s14, 3 }
   0x5   : > { %s659_s15 = smov (%p27_p1, %s25_s15), 0  ;;  %p159_p3 = pnand %p503_p0, %p158_p2 }
   0x6   : > { %p191_p4 = scmp.lt.s32.totalorder (!%p159_p3), %s575_s12, 1 }
   0x7   : > { %162 = sbr.rel (%p159_p3) target bundleno = 380 (0x17c), region = 32 }
   0xc   : > { %v585_v0 = vmov 0   ;;  %v218_v1 = vld [vmem:[%s654_s2] sm:$0xff]  ;;  %s661_s12 = smov (!%p191_p4, %s575_s12), 1  ;;  %v219_v2 = vld [vmem:[%s654_s2 + $0x8] sm:$0xff]  ;;  %vm269_vm0 = vcmask 1043456   ;;  %vm265_vm1 = vcmask 195584  }
   0xd   : > { %314 = vmatprep.mubr.bf16.mxu0 %v585_v0  ;;  %357 = vmatprep.mubr.bf16.mxu1 %v585_v0  ;;  %s523_s18 = smul.u32 48, %s661_s12  ;;  %v560_v15 = vld [vmem:[%s653_s1] sm:$0xff]   ;;  %s522_s26 = sshll.u32 %s661_s12, 4  ;;  %vm404_vm2 = vcmask 7168   ;;  %vm407_vm3 = vcmask 15360  }
   0xe   : > { %549 = vset.pattern.permute.xlu0 %v585_v0  ;;  %s208_s29 = scalar_lea.vmem %s655_s3, %s522_s26 }
   0xf   : > { %222 = vperm.xlu0 %549, %v218_v1   ;;  %s198_s23 = scalar_lea.vmem %s652_s0, %s523_s18 }
  0x10   : > { %v216_v3 = vld [vmem:[%s198_s23 + $0x20] sm:$0xff]  ;;  %v217_v4 = vld [vmem:[%s198_s23 + $0x28] sm:$0xff] }
  0x11   : > { %v513_v5 = vcombine.high %v216_v3, %v216_v3  ;;  %v515_v6 = vcombine.high %v217_v4, %v217_v4  ;;  %v512_v7 = vcombine.low %v216_v3, %v216_v3  ;;  %v514_v8 = vcombine.low %v217_v4, %v217_v4  ;;  %v554_v9 = vld [vmem:[%s198_s23 + $0x4] ss:$16 sps:$4 sm:$0xff]   ;;  %v556_v10 = vld [vmem:[%s198_s23 + $0xc] ss:$16 sps:$4 sm:$0xff]   ;;  %v558_v13 = vld [vmem:[%s198_s23] ss:$16 sps:$4 sm:$0xff]  }
  0x12   : > { %v559_v14 = vld [vmem:[%s198_s23 + $0x8] ss:$16 sps:$4 sm:$0xff]  }
  0x13   : > { %227 = vperm.xlu0 %549, %v219_v2   ;;  %516 = vmatprep.subr.msk.bf16.mxu0 %vm269_vm0, %v513_v5  ;;  %v271_v11 = vsel %vm269_vm0, %v512_v7, 0  ;;  %v277_v12 = vsel %vm269_vm0, %v514_v8, 0 }
  0x14   : > { %518 = vmatprep.subr.msk.bf16.mxu1 %vm269_vm0, %v515_v6  ;;  %295 = vmatpush1.bf16.msra.mxu0 %v271_v11 }
  0x15   : > { %338 = vmatpush1.bf16.msra.mxu1 %v277_v12  ;;  %296 = vmatprep.subr.bf16.mxu0 %v554_v9 }
  0x16   : > { %339 = vmatprep.subr.bf16.mxu1 %v556_v10 }
  0x18   : > { %297 = vmatpush1.bf16.msra.mxu0 %v558_v13 }
  0x19   : > { %340 = vmatpush1.bf16.msra.mxu1 %v559_v14 }
  0x1b   : > { %517 = vmatmul.mubr.msk.bf16.vlgmr.msra.gmra.mxu0 %vm265_vm1, %v560_v15 }
  0x1c   : > { %519 = vmatmul.mubr.msk.bf16.vlgmr.msra.gmra.mxu1 %vm265_vm1, %v560_v15 }
  0x8a   : > { %v223_v16 = vpop.permute.xlu0 %222 }
  0x8e   : > { %v228_v29 = vpop.permute.xlu0 %227 }
  0xdb   : > { %v316_v17 = vpop.f32.mrf.mxu0 }
  0xdc   : > { %v359_v18 = vpop.f32.mrf.mxu1  ;;  %v317_v19 = vadd.f32 %v316_v17, %v223_v16 }
  0xdd   : > { %v360_v20 = vadd.f32 %v359_v18, %v223_v16  ;;  %v318_v21 = vpop.f32.mrf.mxu0 }
  0xde   : > { %v361_v22 = vpop.f32.mrf.mxu1  ;;  %v368_v23 = vmax.f32 %v317_v19, 0.0  ;;  %v319_v24 = vadd.f32 %v318_v21, %v223_v16 }
  0xdf   : > { %v362_v25 = vadd.f32 %v361_v22, %v223_v16  ;;  %v370_v26 = vmax.f32 %v360_v20, 0.0  ;;  %v320_v27 = vpop.f32.mrf.mxu0 }
  0xe0   : > { %v363_v28 = vpop.f32.mrf.mxu1  ;;  %v369_v30 = vmax.f32 %v319_v24, 0.0  ;;  %v321_v32 = vadd.f32 %v320_v27, %v228_v29  ;;  %v386_v36 = vmul.f32 %v368_v23, %v368_v23 }
  0xe1   : > { %v371_v31 = vmax.f32 %v362_v25, 0.0  ;;  %v364_v33 = vadd.f32 %v363_v28, %v228_v29  ;;  %v322_v34 = vpop.f32.mrf.mxu0  ;;  %v388_v40 = vmul.f32 %v370_v26, %v370_v26 }
  0xe2   : > { %v365_v35 = vpop.f32.mrf.mxu1  ;;  %v376_v37 = vadd.f32 %v369_v30, %v368_v23  ;;  %v387_v38 = vmul.f32 %v369_v30, %v369_v30  ;;  %v323_v39 = vadd.f32 %v322_v34, %v228_v29  ;;  %v372_v41 = vmax.f32 %v321_v32, 0.0 }
  0xe3   : > { %v374_v42 = vmax.f32 %v364_v33, 0.0  ;;  %v366_v45 = vadd.f32 %v365_v35, %v228_v29  ;;  %v389_v47 = vmul.f32 %v371_v31, %v371_v31 }
  0xe4   : > { %v394_v43 = vadd.f32 %v387_v38, %v386_v36  ;;  %v373_v44 = vmax.f32 %v323_v39, 0.0  ;;  %v377_v46 = vadd.f32 %v376_v37, %v370_v26  ;;  %v390_v48 = vmul.f32 %v372_v41, %v372_v41 }
  0xe5   : > { %v392_v53 = vmul.f32 %v374_v42, %v374_v42  ;;  %v375_v55 = vmax.f32 %v366_v45, 0.0 }
  0xe6   : > { %v381_v49 = vadd.f32 %v373_v44, %v372_v41  ;;  %v391_v50 = vmul.f32 %v373_v44, %v373_v44  ;;  %v378_v51 = vadd.f32 %v377_v46, %v371_v31  ;;  %v395_v52 = vadd.f32 %v394_v43, %v388_v40 }
  0xe7   : > { %v393_v60 = vmul.f32 %v375_v55, %v375_v55 }
  0xe8   : > { %v399_v54 = vadd.f32 %v391_v50, %v390_v48  ;;  %379 = vadd.xlane.f32.xlu1 %v378_v51  ;;  %v396_v56 = vadd.f32 %v395_v52, %v389_v47  ;;  %v382_v57 = vadd.f32 %v381_v49, %v374_v42 }
  0xea   : > { %397 = vadd.xlane.f32.xlu0 %v396_v56  ;;  %v383_v58 = vadd.f32 %v382_v57, %v375_v55  ;;  %v400_v59 = vadd.f32 %v399_v54, %v392_v53 }
  0xec   : > { %384 = vadd.xlane.f32.xlu1 %v383_v58  ;;  %v401_v61 = vadd.f32 %v400_v59, %v393_v60 }
  0xf0   : > { %402 = vadd.xlane.f32.xlu1 %v401_v61 }
 0x171   : > { %v380_v62 = vpop.xlane.xlu1 %379 }
 0x173   : > { %v398_v63 = vpop.xlane.xlu0 %397 }
 0x174   : > { %v405_v0 = vsel %vm404_vm2, %v380_v62, %v398_v63 }
 0x175   : > { %408 = vst.msk [vmem:[%s208_s29] sm:$0xff] %vm407_vm3, %v405_v0  ;;  %v385_v1 = vpop.xlane.xlu1 %384 }
 0x179   : > { %v403_v2 = vpop.xlane.xlu1 %402 }
 0x17a   : > { %v406_v3 = vsel %vm404_vm2, %v385_v1, %v403_v2 }
 0x17b   : > { %409 = vst.msk [vmem:[%s208_s29 + $0x8] sm:$0xff] %vm407_vm3, %v406_v3 }
 0x17c PF: > { %s13_s14 = sadd.s32 1, %s583_s14   ;;  %s656_s12 = smov %s579_s13 }
 0x17d   : > { %p10_p5 = scmp.ge.s32.totalorder %s13_s14, 4   ;;  %s657_s13 = smov %s659_s15 }
 0x17f   :  { %12 = sbr.rel (!%p10_p5) target bundleno = 2 (0x2), region = 62 }

// kernel: upsample_forward.3
= control target key start
LH: loop header
LB: loop body
LE: loop exit
PB: predicated region body
PF: predicated region fallthrough
CT: control target
= control target key end

     0   :  { %s797_s18 = smov 0   ;;  %s799_s19 = smov 0   ;;  %s937_s0 = inlined_call_operand.vmem [shape: bf16[2,24,512], index: 0, kind: input, shape index: {}]   ;;  %s938_s1 = inlined_call_operand.vmem [shape: bf16[16,24], index: 1, kind: input, shape index: {}]   ;;  %s939_s2 = inlined_call_operand.vmem [shape: f32[16,1], index: 2, kind: input, shape index: {}]   ;;  %s940_s3 = inlined_call_operand.vmem [shape: f32[16,1], index: 3, kind: input, shape index: {}]   ;;  %s941_s4 = inlined_call_operand.vmem [shape: f32[16,1], index: 4, kind: input, shape index: {}]   ;;  %s942_s5 = inlined_call_operand.vmem [shape: f32[2,8,1024], index: 5, kind: output, shape index: {}]  }
   0x1   :  { %s801_s20 = smov 0  }
   0x2 LB: > { %s27_s21 = sadd.s32 1, %s757_s19  ;;  %p677_p0 = scmp.ge.s32.totalorder %s761_s20, 1  ;;  %s761_s20 = sphi %s801_s20, %s15_s20   ;;  %s757_s19 = sphi %s799_s19, %s944_s19   ;;  %s753_s18 = sphi %s797_s18, %s943_s18  }
   0x3   : > { %p29_p1 = scmp.ge.s32.totalorder %s27_s21, 2  ;;  %p208_p2 = scmp.lt.s32.totalorder %s761_s20, 3 }
   0x5   : > { %s946_s21 = smov (%p29_p1, %s27_s21), 0  ;;  %p209_p3 = pnand %p677_p0, %p208_p2 }
   0x6   : > { %p245_p4 = scmp.lt.s32.totalorder (!%p209_p3), %s753_s18, 1  ;;  %s764_s15 = smov (!%p209_p3), 32  }
   0x7   : > { %212 = sbr.rel (%p209_p3) target bundleno = 390 (0x186), region = 40  ;;  %s765_s16 = smov (!%p209_p3), 64  }
   0x8   : > { %s766_s17 = smov (!%p209_p3), 96  }
   0xc   : > { %v763_v0 = vmov 0   ;;  %v273_v1 = vld [vmem:[%s939_s2] sm:$0xff]  ;;  %s948_s18 = smov (!%p245_p4, %s753_s18), 1  ;;  %v274_v3 = vld [vmem:[%s939_s2 + $0x8] sm:$0xff]  ;;  %vm324_vm0 = vcmask 1043456   ;;  %vm320_vm1 = vcmask 195584  }
   0xd   : > { %369 = vmatprep.mubr.bf16.mxu0 %v763_v0  ;;  %412 = vmatprep.mubr.bf16.mxu1 %v763_v0  ;;  %v431_v2 = vld [vmem:[%s940_s3] sm:$0xff]  ;;  %s697_s26 = smul.u32 48, %s948_s18  ;;  %v432_v4 = vld [vmem:[%s940_s3 + $0x8] sm:$0xff]  ;;  %s696_s22 = sshll.u32 %s948_s18, 6  ;;  %vm511_vm2 = vcmask 261120   ;;  %vm515_vm3 = vcmask 785408  }
   0xe   : > { %726 = vset.pattern.permute.xlu0 %v763_v0  ;;  %727 = vset.pattern.permute.xlu1 %v763_v0  ;;  %v451_v15 = vld [vmem:[%s941_s4] sm:$0xff]  ;;  %v452_v16 = vld [vmem:[%s941_s4 + $0x8] sm:$0xff]  ;;  %s890_s25 = scalar_lea.vmem %s942_s5, %s696_s22  ;;  %vm513_vm4 = vcmask 523264  }
   0xf   : > { %277 = vperm.xlu0 %726, %v273_v1   ;;  %435 = vperm.xlu1 %727, %v431_v2   ;;  %s252_s8 = scalar_lea.vmem %s937_s0, %s697_s26  ;;  %v738_v19 = vld [vmem:[%s938_s1] sm:$0xff]  }
  0x10   : > { %v271_v5 = vld [vmem:[%s252_s8 + $0x20] sm:$0xff]  ;;  %v272_v6 = vld [vmem:[%s252_s8 + $0x28] sm:$0xff] }
  0x11   : > { %v687_v7 = vcombine.high %v271_v5, %v271_v5  ;;  %v689_v8 = vcombine.high %v272_v6, %v272_v6  ;;  %v686_v9 = vcombine.low %v271_v5, %v271_v5  ;;  %v688_v10 = vcombine.low %v272_v6, %v272_v6  ;;  %v732_v11 = vld [vmem:[%s252_s8 + $0x4] ss:$16 sps:$4 sm:$0xff]   ;;  %v734_v12 = vld [vmem:[%s252_s8 + $0xc] ss:$16 sps:$4 sm:$0xff]   ;;  %v736_v17 = vld [vmem:[%s252_s8] ss:$16 sps:$4 sm:$0xff]  }
  0x12   : > { %v737_v18 = vld [vmem:[%s252_s8 + $0x8] ss:$16 sps:$4 sm:$0xff]  }
  0x13   : > { %282 = vperm.xlu0 %726, %v274_v3   ;;  %440 = vperm.xlu1 %727, %v432_v4   ;;  %v326_v13 = vsel %vm324_vm0, %v686_v9, 0  ;;  %v332_v14 = vsel %vm324_vm0, %v688_v10, 0 }
  0x14   : > { %690 = vmatprep.subr.msk.bf16.mxu0 %vm324_vm0, %v687_v7  ;;  %692 = vmatprep.subr.msk.bf16.mxu1 %vm324_vm0, %v689_v8 }
  0x15   : > { %350 = vmatpush1.bf16.msra.mxu0 %v326_v13  ;;  %393 = vmatpush1.bf16.msra.mxu1 %v332_v14 }
  0x16   : > { %351 = vmatprep.subr.bf16.mxu0 %v732_v11  ;;  %394 = vmatprep.subr.bf16.mxu1 %v734_v12 }
  0x17   : > { %455 = vperm.xlu0 %726, %v451_v15   ;;  %460 = vperm.xlu1 %727, %v452_v16  }
  0x19   : > { %352 = vmatpush1.bf16.msra.mxu0 %v736_v17  ;;  %395 = vmatpush1.bf16.msra.mxu1 %v737_v18 }
  0x1c   : > { %691 = vmatmul.mubr.msk.bf16.vlgmr.msra.gmra.mxu0 %vm320_vm1, %v738_v19  ;;  %693 = vmatmul.mubr.msk.bf16.vlgmr.msra.gmra.mxu1 %vm320_vm1, %v738_v19 }
  0x8a   : > { %v278_v20 = vpop.permute.xlu0 %277  ;;  %v436_v30 = vpop.permute.xlu1 %435 }
  0x8e   : > { %v283_v21 = vpop.permute.xlu0 %282  ;;  %v441_v51 = vpop.permute.xlu1 %440 }
  0x92   : > { %v456_v33 = vpop.permute.xlu0 %455  ;;  %v461_v57 = vpop.permute.xlu1 %460 }
  0xdc   : > { %v371_v22 = vpop.f32.mrf.mxu0  ;;  %v414_v23 = vpop.f32.mrf.mxu1 }
  0xdd   : > { %v372_v24 = vadd.f32 %v371_v22, %v278_v20  ;;  %v415_v25 = vadd.f32 %v414_v23, %v278_v20 }
  0xde   : > { %v373_v26 = vpop.f32.mrf.mxu0  ;;  %v416_v31 = vpop.f32.mrf.mxu1 }
  0xdf   : > { %v423_v27 = vmax.f32 %v372_v24, 0.0  ;;  %v425_v28 = vmax.f32 %v415_v25, 0.0  ;;  %v374_v29 = vadd.f32 %v373_v26, %v278_v20  ;;  %v417_v37 = vadd.f32 %v416_v31, %v278_v20 }
  0xe0   : > { %v375_v41 = vpop.f32.mrf.mxu0  ;;  %v418_v48 = vpop.f32.mrf.mxu1 }
  0xe1   : > { %v443_v32 = vmul.f32 %v436_v30, %v423_v27  ;;  %v445_v35 = vmul.f32 %v436_v30, %v425_v28  ;;  %v424_v36 = vmax.f32 %v374_v29, 0.0  ;;  %v426_v40 = vmax.f32 %v417_v37, 0.0 }
  0xe2   : > { %v377_v44 = vpop.f32.mrf.mxu0  ;;  %v376_v46 = vadd.f32 %v375_v41, %v283_v21  ;;  %v420_v52 = vpop.f32.mrf.mxu1  ;;  %v419_v54 = vadd.f32 %v418_v48, %v283_v21 }
  0xe3   : > { %v842_v34 = vadd.f32 %v456_v33, %v443_v32  ;;  %v848_v38 = vadd.f32 %v456_v33, %v445_v35  ;;  %v444_v39 = vmul.f32 %v436_v30, %v424_v36  ;;  %v446_v43 = vmul.f32 %v436_v30, %v426_v40 }
  0xe4   : > { %v378_v47 = vadd.f32 %v377_v44, %v283_v21  ;;  %v427_v49 = vmax.f32 %v376_v46, 0.0  ;;  %v421_v56 = vadd.f32 %v420_v52, %v283_v21  ;;  %v429_v59 = vmax.f32 %v419_v54, 0.0 }
  0xe5   : > { %476 = vrot.lane.b32.xlu0 %v842_v34, %s764_s15  ;;  %482 = vrot.lane.b32.xlu1 %v842_v34, %s765_s16  ;;  %v854_v42 = vadd.f32 %v456_v33, %v444_v39  ;;  %v860_v45 = vadd.f32 %v456_v33, %v446_v43 }
  0xe6   : > { %v428_v50 = vmax.f32 %v378_v47, 0.0  ;;  %v447_v53 = vmul.f32 %v441_v51, %v427_v49  ;;  %v430_v61 = vmax.f32 %v421_v56, 0.0  ;;  %v449_v62 = vmul.f32 %v441_v51, %v429_v59 }
  0xe8   : > { %v448_v55 = vmul.f32 %v441_v51, %v428_v50  ;;  %v467_v58 = vadd.f32 %v461_v57, %v447_v53  ;;  %v450_v63 = vmul.f32 %v441_v51, %v430_v61  ;;  %v469_v0 = vadd.f32 %v461_v57, %v449_v62 }
  0xe9   : > { %531 = vrot.lane.b32.xlu0 %v848_v38, %s764_s15  ;;  %537 = vrot.lane.b32.xlu1 %v848_v38, %s765_s16 }
  0xea   : > { %v468_v60 = vadd.f32 %v461_v57, %v448_v55  ;;  %v470_v1 = vadd.f32 %v461_v57, %v450_v63 }
  0xed   : > { %502 = vrot.lane.b32.xlu0 %v854_v42, %s765_s16  ;;  %488 = vrot.lane.b32.xlu1 %v842_v34, %s766_s17 }
  0xf1   : > { %557 = vrot.lane.b32.xlu0 %v860_v45, %s765_s16  ;;  %543 = vrot.lane.b32.xlu1 %v848_v38, %s766_s17 }
  0xf5   : > { %496 = vrot.lane.b32.xlu0 %v854_v42, %s764_s15  ;;  %508 = vrot.lane.b32.xlu1 %v854_v42, %s766_s17 }
  0xf9   : > { %551 = vrot.lane.b32.xlu0 %v860_v45, %s764_s15  ;;  %563 = vrot.lane.b32.xlu1 %v860_v45, %s766_s17 }
  0xfd   : > { %472 = vrot.lane.b32.xlu0 %v467_v58, %s764_s15  ;;  %492 = vrot.lane.b32.xlu1 %v468_v60, %s764_s15 }
 0x101   : > { %485 = vrot.lane.b32.xlu0 %v467_v58, %s766_s17  ;;  %505 = vrot.lane.b32.xlu1 %v468_v60, %s766_s17 }
 0x105   : > { %527 = vrot.lane.b32.xlu0 %v469_v0, %s764_s15  ;;  %547 = vrot.lane.b32.xlu1 %v470_v1, %s764_s15 }
 0x109   : > { %540 = vrot.lane.b32.xlu0 %v469_v0, %s766_s17  ;;  %560 = vrot.lane.b32.xlu1 %v470_v1, %s766_s17 }
 0x10d   : > { %479 = vrot.lane.b32.xlu0 %v467_v58, %s765_s16  ;;  %499 = vrot.lane.b32.xlu1 %v468_v60, %s765_s16 }
 0x111   : > { %534 = vrot.lane.b32.xlu0 %v469_v0, %s765_s16  ;;  %554 = vrot.lane.b32.xlu1 %v470_v1, %s765_s16 }
 0x157   : > { %v477_v2 = vpop.permute.xlu0 %476  ;;  %v483_v3 = vpop.permute.xlu1 %482 }
 0x15b   : > { %v532_v4 = vpop.permute.xlu0 %531  ;;  %v538_v5 = vpop.permute.xlu1 %537 }
 0x15f   : > { %v503_v6 = vpop.permute.xlu0 %502  ;;  %v489_v7 = vpop.permute.xlu1 %488 }
 0x163   : > { %v558_v8 = vpop.permute.xlu0 %557  ;;  %v544_v9 = vpop.permute.xlu1 %543 }
 0x167   : > { %v497_v10 = vpop.permute.xlu0 %496  ;;  %v509_v11 = vpop.permute.xlu1 %508 }
 0x16b   : > { %v552_v12 = vpop.permute.xlu0 %551  ;;  %v564_v13 = vpop.permute.xlu1 %563 }
 0x16f   : > { %v473_v14 = vpop.permute.xlu0 %472  ;;  %v493_v15 = vpop.permute.xlu1 %492 }
 0x170   : > { %v512_v28 = vsel %vm511_vm2, %v842_v34, %v473_v14  ;;  %v520_v29 = vsel %vm511_vm2, %v854_v42, %v493_v15 }
 0x171   : > { %v514_v34 = vsel %vm513_vm4, %v512_v28, %v477_v2  ;;  %v521_v39 = vsel %vm513_vm4, %v520_v29, %v497_v10 }
 0x173   : > { %v486_v16 = vpop.permute.xlu0 %485  ;;  %v506_v17 = vpop.permute.xlu1 %505 }
 0x174   : > { %v517_v18 = vsel %vm511_vm2, %v483_v3, %v486_v16  ;;  %v523_v19 = vsel %vm511_vm2, %v503_v6, %v506_v17 }
 0x175   : > { %v518_v20 = vsel %vm513_vm4, %v517_v18, %v489_v7  ;;  %v524_v21 = vsel %vm513_vm4, %v523_v19, %v509_v11 }
 0x176   : > { %v519_v22 = vsel %vm515_vm3, %v518_v20, %v467_v58  ;;  %v525_v23 = vsel %vm515_vm3, %v524_v21, %v468_v60 }
 0x177   : > { %579 = vst [vmem:[%s890_s25 + $0x8] sm:$0xff] %v519_v22  ;;  %581 = vst [vmem:[%s890_s25 + $0x18] sm:$0xff] %v525_v23  ;;  %v528_v24 = vpop.permute.xlu0 %527  ;;  %v548_v25 = vpop.permute.xlu1 %547 }
 0x178   : > { %v566_v41 = vsel %vm511_vm2, %v848_v38, %v528_v24  ;;  %v572_v42 = vsel %vm511_vm2, %v860_v45, %v548_v25 }
 0x179   : > { %v567_v46 = vsel %vm513_vm4, %v566_v41, %v532_v4  ;;  %v573_v48 = vsel %vm513_vm4, %v572_v42, %v552_v12 }
 0x17b   : > { %v541_v26 = vpop.permute.xlu0 %540  ;;  %v561_v27 = vpop.permute.xlu1 %560 }
 0x17c   : > { %v569_v30 = vsel %vm511_vm2, %v538_v5, %v541_v26  ;;  %v575_v31 = vsel %vm511_vm2, %v558_v8, %v561_v27 }
 0x17d   : > { %v570_v32 = vsel %vm513_vm4, %v569_v30, %v544_v9  ;;  %v576_v33 = vsel %vm513_vm4, %v575_v31, %v564_v13 }
 0x17e   : > { %v571_v35 = vsel %vm515_vm3, %v570_v32, %v469_v0  ;;  %v577_v36 = vsel %vm515_vm3, %v576_v33, %v470_v1 }
 0x17f   : > { %583 = vst [vmem:[%s890_s25 + $0x28] sm:$0xff] %v571_v35  ;;  %585 = vst [vmem:[%s890_s25 + $0x38] sm:$0xff] %v577_v36  ;;  %v480_v37 = vpop.permute.xlu0 %479  ;;  %v500_v40 = vpop.permute.xlu1 %499 }
 0x180   : > { %v516_v43 = vsel %vm515_vm3, %v514_v34, %v480_v37  ;;  %v522_v44 = vsel %vm515_vm3, %v521_v39, %v500_v40 }
 0x181   : > { %578 = vst [vmem:[%s890_s25] sm:$0xff] %v516_v43  ;;  %580 = vst [vmem:[%s890_s25 + $0x10] sm:$0xff] %v522_v44 }
 0x183   : > { %v535_v47 = vpop.permute.xlu0 %534  ;;  %v555_v49 = vpop.permute.xlu1 %554 }
 0x184   : > { %v568_v50 = vsel %vm515_vm3, %v567_v46, %v535_v47  ;;  %v574_v51 = vsel %vm515_vm3, %v573_v48, %v555_v49 }
 0x185   : > { %582 = vst [vmem:[%s890_s25 + $0x20] sm:$0xff] %v568_v50  ;;  %584 = vst [vmem:[%s890_s25 + $0x30] sm:$0xff] %v574_v51 }
 0x186 PF: > { %s15_s20 = sadd.s32 1, %s761_s20   ;;  %s943_s18 = smov %s757_s19 }
 0x187   : > { %p12_p5 = scmp.ge.s32.totalorder %s15_s20, 4   ;;  %s944_s19 = smov %s946_s21 }
 0x189   :  { %14 = sbr.rel (!%p12_p5) target bundleno = 2 (0x2), region = 70 }

</bundles_post_ra>
